<compile_context>
chip_gen: v6e
topology: v6e:2x2x1
jax: 0.10.0
libtpu: 0.0.40
codegen_flags: <defaults>
</compile_context>

<pallas_src>
import functools

import jax
import jax.numpy as jnp
from jax.experimental import pallas as pl
from jax.experimental.pallas import tpu as pltpu

_LANE = 128                 # vreg lane width (last dim)
_SUBLANE_BF16 = 16          # bf16 packs 16 rows per vreg sublane group
_MAX_BM = 512               # per-tile row cap (VMEM / pipelining)
_MIN_SPLIT_BM = 128         # only shard across TCs if each tile keeps >=128 MXU rows
_RESIDENT_VMEM_BUDGET = 8 << 20   # ~half the smallest default scoped VMEM (v5e: 16 MiB)


def _round_up(x, m):
    return ((x + m - 1) // m) * m


def _cdiv(a, b):
    return -(-a // b)


# ----------------------------------------------------------------------------
# Kernel
# ----------------------------------------------------------------------------
def _mlp_kernel(x_ref, *refs, n_layers):
    """Fused MLP on one (bm, K0) batch tile; activations never leave VMEM.

    refs = (W_0, b_0, ..., W_{L-1}, b_{L-1}, out).  W_i are bf16 (Kp, Np),
    b_i are f32 (1, Np).  ReLU after every layer except the last.
    """
    o_ref = refs[-1]
    wb = refs[:-1]
    h = x_ref[...]                                   # bf16 (bm, K0), straight off DMA
    for li in range(n_layers):
        w = wb[2 * li][...]                          # (Kp, Np) bf16
        b = wb[2 * li + 1][...]                      # (1, Np) f32, broadcasts over rows
        y = jnp.dot(h, w, preferred_element_type=jnp.float32) + b
        if li < n_layers - 1:
            h = jnp.maximum(y, 0.0).astype(jnp.bfloat16)
        else:
            h = y                                    # no ReLU after the last layer
    o_ref[...] = h.astype(o_ref.dtype)


# ----------------------------------------------------------------------------
# Tiling heuristics
# ----------------------------------------------------------------------------
@functools.lru_cache(maxsize=None)
def _num_tensorcores():
    """2 on megacore parts (v7x) where grid steps genuinely shard across cores;
    1 on v5e / v6e where splitting the batch only adds per-step overhead."""
    try:
        kind = jax.devices()[0].device_kind.lower()
    except Exception:
        return 1
    return 2 if "v7" in kind else 1


def _choose_bm(m):
    """Batch tile: multiple of 16, <=512 rows; one max-size tile on 1-TC chips;
    >=2 tiles on 2-TC chips only when each tile still fills >=128 MXU rows;
    bm ~= ceil(m/steps) so row-padding waste stays bounded (<16 rows/step)."""
    mp = _round_up(m, _SUBLANE_BF16)
    steps = _cdiv(mp, _MAX_BM)
    n_cores = _num_tensorcores()
    if n_cores > 1:
        steps = max(steps, min(n_cores, mp // _MIN_SPLIT_BM))
    steps = max(steps, 1)
    return _round_up(_cdiv(mp, steps), _SUBLANE_BF16)


@functools.lru_cache(maxsize=None)
def _resident_pipeline_mode():
    """pl.Buffered(1) for grid-constant (resident) blocks: no double buffer is
    needed when the index_map never changes, halving their VMEM share (matters
    once dims grow, especially on v7x's 64 MiB VMEM).  Probed once on a tiny
    copy kernel; falls back to default pipelining if this build rejects it."""
    try:
        try:
            mode = pl.Buffered(buffer_count=1)
        except TypeError:
            mode = pl.Buffered(1)

        def _copy(x_ref, o_ref):
            o_ref[...] = x_ref[...]

        probe = pl.pallas_call(
            _copy,
            out_shape=jax.ShapeDtypeStruct((8, _LANE), jnp.float32),
            grid=(1,),
            in_specs=[pl.BlockSpec((8, _LANE), lambda i: (0, 0), pipeline_mode=mode)],
            out_specs=pl.BlockSpec((8, _LANE), lambda i: (0, 0)),
        )
        jax.jit(probe).lower(jax.ShapeDtypeStruct((8, _LANE), jnp.float32)).compile()
        return mode
    except Exception:
        return None


def _resident_spec(shape, mode):
    if mode is None:
        return pl.BlockSpec(shape, lambda i: (0, 0))
    return pl.BlockSpec(shape, lambda i: (0, 0), pipeline_mode=mode)


# ----------------------------------------------------------------------------
# Parameter packing
# ----------------------------------------------------------------------------
def init_params(dims, key):
    """Synthetic nn.Linear-style init U(-1/sqrt(fan_in), +); W stored (in, out)."""
    params = []
    for i in range(len(dims) - 1):
        fan_in, fan_out = dims[i], dims[i + 1]
        key, kw, kb = jax.random.split(key, 3)
        bound = 1.0 / jnp.sqrt(fan_in)
        w = jax.random.uniform(kw, (fan_in, fan_out), jnp.float32, -bound, bound)
        b = jax.random.uniform(kb, (fan_out,), jnp.float32, -bound, bound)
        params.append((w, b))
    return params


def prepare_params(params):
    """One-time packing for the kernel:
    * W -> bf16 (MXU-native), out-dim padded to 128 lanes; in-dim padded to 16
      for layer 0 (matching the un-lane-padded x feed) and to 128 for later
      layers (matching the previous layer's lane-padded activations).
    * b -> (1, Np) f32 (accumulator-precision epilogue)."""
    packed = []
    for li, (w, b) in enumerate(params):
        k, n = w.shape
        kp = _round_up(k, _SUBLANE_BF16 if li == 0 else _LANE)
        np_ = _round_up(n, _LANE)
        wp = jnp.zeros((kp, np_), jnp.bfloat16).at[:k, :n].set(w.astype(jnp.bfloat16))
        bp = jnp.zeros((1, np_), jnp.float32).at[0, :n].set(b)
        packed.append((wp, bp))
    return packed


# ----------------------------------------------------------------------------
# Forward
# ----------------------------------------------------------------------------
@functools.partial(jax.jit, static_argnames=("n_out",))
def neural_network_forward(x, kparams, *, n_out):
    """Equivalent of NeuralNetwork.forward for pre-packed params."""
    m, k = x.shape
    n_layers = len(kparams)
    k0_pad = kparams[0][0].shape[0]
    n_last_pad = kparams[-1][0].shape[1]

    mode = _resident_pipeline_mode()
    bufs = 1 if mode is not None else 2
    resident_bytes = bufs * sum(
        int(w.size) * w.dtype.itemsize + int(b.size) * b.dtype.itemsize
        for w, b in kparams)
    if resident_bytes > _RESIDENT_VMEM_BUDGET:
        # TODO(synk): for large dims switch to K/N tiling with an 'arbitrary'
        # reduction grid axis + f32 VMEM accumulator and raise vmem_limit_bytes
        # (threshold halved on v7x: 64 MiB physical VMEM); fp8 weights are a
        # further v7x-only option.  Not needed at factor-regression sizes.
        raise NotImplementedError("weights too large for the resident-weight kernel")

    bm = _choose_bm(m)
    m_pad = _round_up(m, bm)
    # Row-pad to the tile grid and cast to bf16 ONCE in the wrapper (the MXU
    # truncates to bf16 anyway); K stays at its real 16-aligned width, so no
    # 4x K-pad DMA and half the bytes per element vs the f32 128-lane pad.
    xp = jnp.zeros((m_pad, k0_pad), jnp.bfloat16).at[:m, :k].set(
        x.astype(jnp.bfloat16))

    in_specs = [pl.BlockSpec((bm, k0_pad), lambda i: (i, 0))]
    flat_args = []
    for w, b in kparams:
        kp, np_ = w.shape
        in_specs.append(_resident_spec((kp, np_), mode))   # weights resident in VMEM
        in_specs.append(_resident_spec((1, np_), mode))    # bias resident in VMEM
        flat_args.extend((w, b))

    out = pl.pallas_call(
        functools.partial(_mlp_kernel, n_layers=n_layers),
        out_shape=jax.ShapeDtypeStruct((m_pad, n_last_pad), jnp.bfloat16),
        grid=(m_pad // bm,),
        in_specs=in_specs,
        out_specs=pl.BlockSpec((bm, n_last_pad), lambda i: (i, 0)),
        compiler_params=pltpu.CompilerParams(dimension_semantics=("parallel",)),
    )(xp, *flat_args)
    # bf16 writeback halves HBM traffic on the 128-lane-padded output; slice the
    # logical columns and upcast for the (PyTorch-f32) caller.
    return out[:m, :n_out].astype(jnp.float32)


def _reference_forward(x, params, matmul_dtype=jnp.float32):
    """Pure-JAX reference; matmul_dtype=bf16 mirrors the kernel's MXU casting."""
    h = x
    n = len(params)
    for li, (w, b) in enumerate(params):
        h = jnp.dot(h.astype(matmul_dtype), w.astype(matmul_dtype),
                    preferred_element_type=jnp.float32) + b
        if li < n - 1:
            h = jnp.maximum(h, 0.0)
    return h


if __name__ == "__main__":
    key = jax.random.PRNGKey(0)
    kx, kp = jax.random.split(key)

    dims = [32, 64, 64, 8]          # `dims` argument of NeuralNetwork
    batch = 8
    x = jax.random.normal(kx, (batch, dims[0]), jnp.float32)

    params = init_params(dims, kp)          # torch-Linear-equivalent params
    kparams = prepare_params(params)        # padded / bf16-packed for the kernel

    _resident_pipeline_mode()               # warm the Buffered(1) probe outside jit

    out = neural_network_forward(x, kparams, n_out=dims[-1])
    out = jax.block_until_ready(out)
    assert out.shape == (batch, dims[-1])

    # Tight check vs a reference using the same bf16-matmul casting (tolerance
    # covers the kernel's final bf16 output rounding).
    ref_bf16 = _reference_forward(x, params, matmul_dtype=jnp.bfloat16)
    assert jnp.allclose(out, ref_bf16, atol=1e-2, rtol=1e-2), (
        float(jnp.max(jnp.abs(out - ref_bf16))))

    # Loose check vs the full-f32 PyTorch-equivalent math.
    ref_f32 = _reference_forward(x, params, matmul_dtype=jnp.float32)
    assert jnp.allclose(out, ref_f32, atol=5e-2, rtol=5e-2), (
        float(jnp.max(jnp.abs(out - ref_f32))))

    print("KERNEL_OK")
</pallas_src>

<mosaic_0001>
module attributes {stable_mosaic.version = 11 : i64} {
  func.func @_mlp_kernel(%arg0: i32, %arg1: memref<16x32xbf16, #tpu.memory_space<vmem>>, %arg2: memref<32x128xbf16, #tpu.memory_space<vmem>>, %arg3: memref<1x128xf32, #tpu.memory_space<vmem>>, %arg4: memref<128x128xbf16, #tpu.memory_space<vmem>>, %arg5: memref<1x128xf32, #tpu.memory_space<vmem>>, %arg6: memref<128x128xbf16, #tpu.memory_space<vmem>>, %arg7: memref<1x128xf32, #tpu.memory_space<vmem>>, %arg8: memref<16x128xbf16, #tpu.memory_space<vmem>>) attributes {dimension_semantics = [#tpu.dimension_semantics<parallel>], iteration_bounds = array<i64: 1>, scalar_prefetch = 0 : i64, scratch_operands = 0 : i64, tpu.core_type = #tpu.core_type<tc>, window_params = [{transform_indices = @transform_0, window_bounds = array<i64: 16, 32>}, {pipeline_mode = #tpu.pipeline_mode<synchronous>, transform_indices = @transform_1, window_bounds = array<i64: 32, 128>}, {pipeline_mode = #tpu.pipeline_mode<synchronous>, transform_indices = @transform_2, window_bounds = array<i64: 1, 128>}, {pipeline_mode = #tpu.pipeline_mode<synchronous>, transform_indices = @transform_3, window_bounds = array<i64: 128, 128>}, {pipeline_mode = #tpu.pipeline_mode<synchronous>, transform_indices = @transform_4, window_bounds = array<i64: 1, 128>}, {pipeline_mode = #tpu.pipeline_mode<synchronous>, transform_indices = @transform_5, window_bounds = array<i64: 128, 128>}, {pipeline_mode = #tpu.pipeline_mode<synchronous>, transform_indices = @transform_6, window_bounds = array<i64: 1, 128>}, {transform_indices = @transform_7, window_bounds = array<i64: 16, 128>}]} {
    %c0 = arith.constant 0 : index
    %c0_0 = arith.constant 0 : index
    %0 = vector.load %arg1[%c0, %c0_0] : memref<16x32xbf16, #tpu.memory_space<vmem>>, vector<16x32xbf16>
    %c0_1 = arith.constant 0 : index
    %c0_2 = arith.constant 0 : index
    %1 = vector.load %arg2[%c0_1, %c0_2] : memref<32x128xbf16, #tpu.memory_space<vmem>>, vector<32x128xbf16>
    %c0_3 = arith.constant 0 : index
    %c0_4 = arith.constant 0 : index
    %2 = vector.load %arg3[%c0_3, %c0_4] : memref<1x128xf32, #tpu.memory_space<vmem>>, vector<1x128xf32>
    %cst = arith.constant dense<0.000000e+00> : vector<16x128xf32>
    %3 = tpu.matmul %0, %1, %cst {dimension_numbers = #tpu.dot_dimension_numbers<[1], [0], [0], [1], [0, 0, 1, 1], [], []>} : vector<16x32xbf16>, vector<32x128xbf16>, vector<16x128xf32> -> vector<16x128xf32>
    %4 = vector.broadcast %2 : vector<1x128xf32> to vector<16x128xf32>
    %5 = arith.addf %3, %4 : vector<16x128xf32>
    %cst_5 = arith.constant 0.000000e+00 : f32
    %6 = vector.broadcast %cst_5 : f32 to vector<16x128xf32>
    %7 = arith.maximumf %5, %6 : vector<16x128xf32>
    %8 = arith.truncf %7 : vector<16x128xf32> to vector<16x128xbf16>
    %c0_6 = arith.constant 0 : index
    %c0_7 = arith.constant 0 : index
    %9 = vector.load %arg4[%c0_6, %c0_7] : memref<128x128xbf16, #tpu.memory_space<vmem>>, vector<128x128xbf16>
    %c0_8 = arith.constant 0 : index
    %c0_9 = arith.constant 0 : index
    %10 = vector.load %arg5[%c0_8, %c0_9] : memref<1x128xf32, #tpu.memory_space<vmem>>, vector<1x128xf32>
    %cst_10 = arith.constant dense<0.000000e+00> : vector<16x128xf32>
    %11 = tpu.matmul %8, %9, %cst_10 {dimension_numbers = #tpu.dot_dimension_numbers<[1], [0], [0], [1], [0, 0, 1, 1], [], []>} : vector<16x128xbf16>, vector<128x128xbf16>, vector<16x128xf32> -> vector<16x128xf32>
    %12 = vector.broadcast %10 : vector<1x128xf32> to vector<16x128xf32>
    %13 = arith.addf %11, %12 : vector<16x128xf32>
    %cst_11 = arith.constant 0.000000e+00 : f32
    %14 = vector.broadcast %cst_11 : f32 to vector<16x128xf32>
    %15 = arith.maximumf %13, %14 : vector<16x128xf32>
    %16 = arith.truncf %15 : vector<16x128xf32> to vector<16x128xbf16>
    %c0_12 = arith.constant 0 : index
    %c0_13 = arith.constant 0 : index
    %17 = vector.load %arg6[%c0_12, %c0_13] : memref<128x128xbf16, #tpu.memory_space<vmem>>, vector<128x128xbf16>
    %c0_14 = arith.constant 0 : index
    %c0_15 = arith.constant 0 : index
    %18 = vector.load %arg7[%c0_14, %c0_15] : memref<1x128xf32, #tpu.memory_space<vmem>>, vector<1x128xf32>
    %cst_16 = arith.constant dense<0.000000e+00> : vector<16x128xf32>
    %19 = tpu.matmul %16, %17, %cst_16 {dimension_numbers = #tpu.dot_dimension_numbers<[1], [0], [0], [1], [0, 0, 1, 1], [], []>} : vector<16x128xbf16>, vector<128x128xbf16>, vector<16x128xf32> -> vector<16x128xf32>
    %20 = vector.broadcast %18 : vector<1x128xf32> to vector<16x128xf32>
    %21 = arith.addf %19, %20 : vector<16x128xf32>
    %22 = arith.truncf %21 : vector<16x128xf32> to vector<16x128xbf16>
    %c0_17 = arith.constant 0 : index
    %c0_18 = arith.constant 0 : index
    %23 = vector.load %arg8[%c0_17, %c0_18] : memref<16x128xbf16, #tpu.memory_space<vmem>>, vector<16x128xbf16>
    tpu.vector_store %arg8[%c0_17, %c0_18], %22 {strides = array<i32>} : memref<16x128xbf16, #tpu.memory_space<vmem>>, vector<16x128xbf16>,
    return
  }
  func.func @transform_0(%arg0: i32) -> (i32, i32) {
    %c0_i32 = arith.constant 0 : i32
    %c0_i32_0 = arith.constant 0 : i32
    return %arg0, %c0_i32 : i32, i32
  }
  func.func @transform_1(%arg0: i32) -> (i32, i32) {
    %c0_i32 = arith.constant 0 : i32
    %c0_i32_0 = arith.constant 0 : i32
    %c0_i32_1 = arith.constant 0 : i32
    return %c0_i32, %c0_i32_0 : i32, i32
  }
  func.func @transform_2(%arg0: i32) -> (i32, i32) {
    %c0_i32 = arith.constant 0 : i32
    %c0_i32_0 = arith.constant 0 : i32
    %c0_i32_1 = arith.constant 0 : i32
    return %c0_i32, %c0_i32_0 : i32, i32
  }
  func.func @transform_3(%arg0: i32) -> (i32, i32) {
    %c0_i32 = arith.constant 0 : i32
    %c0_i32_0 = arith.constant 0 : i32
    %c0_i32_1 = arith.constant 0 : i32
    return %c0_i32, %c0_i32_0 : i32, i32
  }
  func.func @transform_4(%arg0: i32) -> (i32, i32) {
    %c0_i32 = arith.constant 0 : i32
    %c0_i32_0 = arith.constant 0 : i32
    %c0_i32_1 = arith.constant 0 : i32
    return %c0_i32, %c0_i32_0 : i32, i32
  }
  func.func @transform_5(%arg0: i32) -> (i32, i32) {
    %c0_i32 = arith.constant 0 : i32
    %c0_i32_0 = arith.constant 0 : i32
    %c0_i32_1 = arith.constant 0 : i32
    return %c0_i32, %c0_i32_0 : i32, i32
  }
  func.func @transform_6(%arg0: i32) -> (i32, i32) {
    %c0_i32 = arith.constant 0 : i32
    %c0_i32_0 = arith.constant 0 : i32
    %c0_i32_1 = arith.constant 0 : i32
    return %c0_i32, %c0_i32_0 : i32, i32
  }
  func.func @transform_7(%arg0: i32) -> (i32, i32) {
    %c0_i32 = arith.constant 0 : i32
    %c0_i32_0 = arith.constant 0 : i32
    return %arg0, %c0_i32 : i32, i32
  }
}

</mosaic_0001>

<bundles_post_ra>
// kernel: neural_network_forward.1
= control target key start
LH: loop header
LB: loop body
LE: loop exit
PB: predicated region body
PF: predicated region fallthrough
CT: control target
= control target key end

     0   :  { %12 = vsyncpa [#allocation3], 0  ;;  %s643_s0 = inlined_call_operand.vmem [shape: bf16[16,32], index: 0, kind: input, shape index: {}]   ;;  %s644_s1 = inlined_call_operand.vmem [shape: bf16[32,128], index: 1, kind: input, shape index: {}]   ;;  %s645_s2 = inlined_call_operand.vmem [shape: f32[1,128], index: 2, kind: input, shape index: {}]   ;;  %s646_s3 = inlined_call_operand.hbm [shape: bf16[128,128], index: 3, kind: input, shape index: {}]   ;;  %s647_s4 = inlined_call_operand.vmem [shape: f32[1,128], index: 4, kind: input, shape index: {}]   ;;  %s648_s5 = inlined_call_operand.hbm [shape: bf16[128,128], index: 5, kind: input, shape index: {}]   ;;  %s649_s6 = inlined_call_operand.vmem [shape: f32[1,128], index: 6, kind: input, shape index: {}]   ;;  %s650_s7 = inlined_call_operand.vmem [shape: bf16[16,128], index: 7, kind: output, shape index: {}]  }
   0x1   :  { %13 = vsyncpa [#allocation5], 0  ;;  %s546_s24 = smov [#allocation2]  }
   0x2   :  { %s25_s25 = sshll.u32 %s546_s24, 4  ;;  %s26_s25 = int_to_ptr.vmem [resolvable:$true] %s25_s25 }
   0x3   :  { %s510_s26 = scalar_lea.vmem %s26_s25, 1024  ;;  %p515_p1 = scmp.lt.s32.totalorder %s26_s25, %s26_s25 }
   0x4   :  { %p511_p0 = scmp.ne.s32.totalorder %s26_s25, %s510_s26  ;;  %p516_p2 = scmp.lt.s32.totalorder %s510_s26, %s510_s26 }
   0x6   :  { %p517_p3 = por %p516_p2, %p515_p1 }
   0x8   :  { %p518_p4 = pnand %p517_p3, %p511_p0 }
   0xa   :  { %521 = shalt.err (!%p518_p4)
}
   0xb   :  { %s547_s27 = smov 64   ;;  %s548_s28 = smov 4  }
   0xc   :  { %31 = dma.hbm_to_vmem [thread:$0]  %s646_s3, 1024, %s26_s25, [#allocation3], %s547_s27, %s547_s27, %s548_s28  }
   0xd   :  { %s549_s8 = smov [#allocation4]  }
   0xe   :  { %s39_s9 = sshll.u32 %s549_s8, 4  ;;  %s40_s9 = int_to_ptr.vmem [resolvable:$true] %s39_s9 }
   0xf   :  { %s530_s10 = scalar_lea.vmem %s40_s9, 1024  ;;  %p535_p6 = scmp.lt.s32.totalorder %s40_s9, %s40_s9 }
  0x10   :  { %p531_p5 = scmp.ne.s32.totalorder %s40_s9, %s530_s10  ;;  %p536_p7 = scmp.lt.s32.totalorder %s530_s10, %s530_s10 }
  0x12   :  { %p537_p8 = por %p536_p7, %p535_p6 }
  0x14   :  { %p538_p9 = pnand %p537_p8, %p531_p5 }
  0x16   :  { %541 = shalt.err (!%p538_p9)
}
  0x17   :  { %45 = dma.hbm_to_vmem [thread:$0]  %s648_s5, 1024, %s40_s9, [#allocation5], %s547_s27, %s547_s27, %s548_s28  }
  0x18   :  { %542 = dma.done.wait [#allocation3], 1024  }
  0x19   :  { %543 = vsyncadd [#allocation3], 4294966272 }
  0x1a   :  { %544 = dma.done.wait [#allocation5], 1024  }
  0x1b   :  { %545 = vsyncadd [#allocation5], 4294966272  ;;  %v550_v0 = vmov 0.0   ;;  %vm551_vm0 = vmmov 0   ;;  %v483_v1 = vld [vmem:[%s644_s1 + $0x8] sm:$0xff]   ;;  %v484_v2 = vld [vmem:[%s644_s1] sm:$0xff]  }
  0x1c   :  { %429 = vmatprep.subr.bf16.mxu0 %v550_v0  ;;  %433 = vmatprep.mubr.msk.bf16.mxu0 %vm551_vm0, %v550_v0  ;;  %v486_v3 = vld [vmem:[#allocation2 + $0x38] sm:$0xff]   ;;  %v485_v4 = vld [vmem:[%s643_s0] sm:$0xff]   ;;  %v487_v5 = vld [vmem:[#allocation2 + $0x30] sm:$0xff]   ;;  %vm85_vm1 = vcmask 261120  }
  0x1d   :  { %437 = vmatprep.subr.bf16.mxu1 %v550_v0  ;;  %453 = vmatprep.mubr.msk.bf16.mxu1 %vm551_vm0, %v550_v0  ;;  %v488_v6 = vld [vmem:[#allocation2 + $0x28] sm:$0xff]   ;;  %v489_v7 = vld [vmem:[#allocation2 + $0x20] sm:$0xff]   ;;  %v490_v8 = vld [vmem:[#allocation2 + $0x18] sm:$0xff]  }
  0x1e   :  { %430 = vmatpush3.bf16.msra.mxu0 %v483_v1  ;;  %438 = vmatpush3.bf16.msra.mxu1 %v486_v3  ;;  %v491_v9 = vld [vmem:[#allocation2 + $0x10] sm:$0xff]   ;;  %v492_v10 = vld [vmem:[#allocation2 + $0x8] sm:$0xff]   ;;  %v493_v11 = vld [vmem:[#allocation2] sm:$0xff]  }
  0x1f   :  { %431 = vmatprep.subr.bf16.mxu0 %v550_v0  ;;  %439 = vmatprep.subr.bf16.mxu1 %v550_v0  ;;  %v494_v12 = vld [vmem:[#allocation4 + $0x38] sm:$0xff]   ;;  %v495_v13 = vld [vmem:[#allocation4 + $0x30] sm:$0xff]   ;;  %v496_v14 = vld [vmem:[#allocation4 + $0x28] sm:$0xff]  }
  0x20   :  { %v497_v15 = vld [vmem:[#allocation4 + $0x20] sm:$0xff]   ;;  %v498_v16 = vld [vmem:[#allocation4 + $0x18] sm:$0xff]   ;;  %v499_v27 = vld [vmem:[#allocation4 + $0x10] sm:$0xff]  }
  0x21   :  { %v376_v17 = vld [vmem:[%s645_s2] ss:$0 sm:$0xff]  ;;  %v500_v28 = vld [vmem:[#allocation4 + $0x8] sm:$0xff]  }
  0x22   :  { %432 = vmatpush3.bf16.msra.mxu0 %v484_v2  ;;  %440 = vmatpush3.bf16.msra.mxu1 %v487_v5  ;;  %v501_v29 = vld [vmem:[#allocation4] sm:$0xff]  }
  0x23   :  { %457 = vmatprep.subr.bf16.mxu0 %v550_v0  ;;  %441 = vmatprep.subr.bf16.mxu1 %v550_v0  ;;  %v381_v30 = vld [vmem:[%s647_s4] ss:$0 sm:$0xff] }
  0x24   :  { %v390_v41 = vld [vmem:[%s649_s6] ss:$0 sm:$0xff] }
  0x25   :  { %434 = vmatmul.mubr.msk.bf16.vlgmr.msra.gmra.mxu0 %vm85_vm1, %v485_v4 }
  0x26   :  { %473 = vmatprep.mubr.msk.bf16.mxu0 %vm551_vm0, %v550_v0  ;;  %442 = vmatpush3.bf16.msra.mxu1 %v488_v6 }
  0x27   :  { %443 = vmatprep.subr.bf16.mxu1 %v550_v0  ;;  %458 = vmatpush3.bf16.msra.mxu0 %v494_v12 }
  0x28   :  { %459 = vmatprep.subr.bf16.mxu0 %v550_v0 }
  0x2a   :  { %444 = vmatpush3.bf16.msra.mxu1 %v489_v7 }
  0x2b   :  { %445 = vmatprep.subr.bf16.mxu1 %v550_v0  ;;  %460 = vmatpush3.bf16.msra.mxu0 %v495_v13 }
  0x2c   :  { %461 = vmatprep.subr.bf16.mxu0 %v550_v0 }
  0x2e   :  { %446 = vmatpush3.bf16.msra.mxu1 %v490_v8 }
  0x2f   :  { %447 = vmatprep.subr.bf16.mxu1 %v550_v0  ;;  %462 = vmatpush3.bf16.msra.mxu0 %v496_v14 }
  0x30   :  { %463 = vmatprep.subr.bf16.mxu0 %v550_v0 }
  0x32   :  { %448 = vmatpush3.bf16.msra.mxu1 %v491_v9 }
  0x33   :  { %449 = vmatprep.subr.bf16.mxu1 %v550_v0  ;;  %464 = vmatpush3.bf16.msra.mxu0 %v497_v15 }
  0x34   :  { %465 = vmatprep.subr.bf16.mxu0 %v550_v0 }
  0x36   :  { %450 = vmatpush3.bf16.msra.mxu1 %v492_v10 }
  0x37   :  { %451 = vmatprep.subr.bf16.mxu1 %v550_v0  ;;  %466 = vmatpush3.bf16.msra.mxu0 %v498_v16 }
  0x38   :  { %467 = vmatprep.subr.bf16.mxu0 %v550_v0 }
  0x3a   :  { %452 = vmatpush3.bf16.msra.mxu1 %v493_v11 }
  0x3b   :  { %468 = vmatpush3.bf16.msra.mxu0 %v499_v27 }
  0x3c   :  { %469 = vmatprep.subr.bf16.mxu0 %v550_v0 }
  0x3f   :  { %470 = vmatpush3.bf16.msra.mxu0 %v500_v28 }
  0x40   :  { %471 = vmatprep.subr.bf16.mxu0 %v550_v0 }
  0x43   :  { %472 = vmatpush3.bf16.msra.mxu0 %v501_v29 }
  0xe5   :  { %v123_v18 = vpop.f32.mrf.mxu0 }
  0xe6   :  { %v124_v20 = vadd.f32 %v376_v17, %v123_v18 }
  0xe7   :  { %v435_v19 = vpop.f32.mrf.mxu0 }
  0xe8   :  { %v130_v24 = vmax.f32 %v124_v20, 0.0 }
  0xe9   :  { %v126_v21 = vpop.f32.mrf.mxu0 }
  0xea   :  { %v127_v22 = vadd.f32 %v376_v17, %v126_v21 }
  0xeb   :  { %v436_v23 = vpop.f32.mrf.mxu0 }
  0xec   :  { %v131_v25 = vmax.f32 %v127_v22, 0.0 }
  0xee   :  { %v132_v26 = vpack.c.bf16 %v131_v25, %v130_v24 }
  0xf0   :  { %454 = vmatmul.mubr.bf16.vlgmr.msra.gmra.mxu1 %v132_v26 }
 0x1b0   :  { %v238_v31 = vpop.f32.mrf.mxu1 }
 0x1b1   :  { %v239_v33 = vadd.f32 %v381_v30, %v238_v31 }
 0x1b2   :  { %v455_v32 = vpop.f32.mrf.mxu1 }
 0x1b3   :  { %v245_v37 = vmax.f32 %v239_v33, 0.0 }
 0x1b4   :  { %v241_v34 = vpop.f32.mrf.mxu1 }
 0x1b5   :  { %v242_v35 = vadd.f32 %v381_v30, %v241_v34 }
 0x1b6   :  { %v456_v36 = vpop.f32.mrf.mxu1 }
 0x1b7   :  { %v246_v38 = vmax.f32 %v242_v35, 0.0 }
 0x1b9   :  { %v247_v39 = vpack.c.bf16 %v246_v38, %v245_v37 }
 0x1bb   :  { %474 = vmatmul.mubr.bf16.vlgmr.msra.gmra.mxu0 %v247_v39 }
 0x27b   :  { %v353_v40 = vpop.f32.mrf.mxu0 }
 0x27c   :  { %v354_v44 = vadd.f32 %v390_v41, %v353_v40 }
 0x27d   :  { %v475_v42 = vpop.f32.mrf.mxu0 }
 0x27f   :  { %v356_v43 = vpop.f32.mrf.mxu0 }
 0x280   :  { %v357_v45 = vadd.f32 %v390_v41, %v356_v43 }
 0x281   :  { %v476_v46 = vpop.f32.mrf.mxu0 }
 0x282   :  { %v406_v47 = vpack.c.bf16 %v357_v45, %v354_v44 }
 0x284   :  { %407 = vst [vmem:[%s650_s7] sm:$0xff] %v406_v47  }
 0x285   :  { %374 = vsyncpa [#allocation3], 1 }
 0x286   :  { %375 = vsyncpa [#allocation5], 1 }

</bundles_post_ra>
